<compile_context>
chip_gen: v6e
topology: v6e:2x2x1
jax: 0.10.0
libtpu: 0.0.40
codegen_flags: <defaults>
</compile_context>

<pallas_src>
import math

import jax
import jax.numpy as jnp
from jax.experimental import pallas as pl
from jax.experimental.pallas import tpu as pltpu

_MIB = 1024 * 1024


def _round_up(x: int, m: int) -> int:
    return ((x + m - 1) // m) * m


def _vmem_capacity_bytes() -> int:
    try:
        info = pltpu.get_tpu_info()
        cap = getattr(info, "vmem_capacity_bytes", None)
        if cap:
            return int(cap)
    except Exception:
        pass
    return 64 * _MIB  # conservative (v7x-sized) fallback


# --------------------------------------------------------------------------
# Kernels
# --------------------------------------------------------------------------
def _ffn_kernel_accum_out(x_ref, wg_ref, w2_ref, o_ref):
    """f32 output: accumulate the down-projection directly into o_ref."""
    j = pl.program_id(1)

    @pl.when(j == 0)
    def _init():
        o_ref[...] = jnp.zeros_like(o_ref)

    x = x_ref[...]
    # Fused gate/up projection: one (tm,dim) x (dim,2*tn) matmul.
    g = jnp.dot(x, wg_ref[...], preferred_element_type=jnp.float32)
    tn = g.shape[1] // 2                      # static
    x1 = g[:, :tn]
    x3 = g[:, tn:]
    h = (x1 * jax.nn.sigmoid(x1)) * x3        # SiLU gating in f32
    o_ref[...] += jnp.dot(h.astype(w2_ref.dtype), w2_ref[...],
                          preferred_element_type=jnp.float32)


def _ffn_kernel_scratch_acc(x_ref, wg_ref, w2_ref, o_ref, acc_ref):
    """Non-f32 output (e.g. bf16): f32 scratch accumulator, cast on writeback."""
    j = pl.program_id(1)

    @pl.when(j == 0)
    def _init():
        acc_ref[...] = jnp.zeros_like(acc_ref)

    x = x_ref[...]
    g = jnp.dot(x, wg_ref[...], preferred_element_type=jnp.float32)
    tn = g.shape[1] // 2
    x1 = g[:, :tn]
    x3 = g[:, tn:]
    h = (x1 * jax.nn.sigmoid(x1)) * x3
    acc_ref[...] += jnp.dot(h.astype(w2_ref.dtype), w2_ref[...],
                            preferred_element_type=jnp.float32)

    @pl.when(j == pl.num_programs(1) - 1)
    def _writeback():
        o_ref[...] = acc_ref[...].astype(o_ref.dtype)


# --------------------------------------------------------------------------
# One-time weight preparation (hoisted out of the per-call hot path)
# --------------------------------------------------------------------------
def prepare_ffn_weights(w1_t, w3_t, w2_t, *, tn=None,
                        compute_dtype=jnp.bfloat16):
    """w1_t/w3_t: (dim, hidden) = PyTorch w1/w3 weights transposed.
       w2_t:      (hidden, dim) = PyTorch w2 weight transposed.

    Returns (wg, w2c, tn):
      wg : (dim_pad, 2*H_pad) compute_dtype. Hidden-tile-interleaved layout:
           columns [j*2tn, j*2tn+tn) are w1's tile j, the next tn are w3's.
      w2c: (H_pad, dim_pad) compute_dtype, zero-padded (exact).
    """
    dim, hidden = w1_t.shape
    assert w3_t.shape == (dim, hidden) and w2_t.shape == (hidden, dim)

    vmem_cap = _vmem_capacity_bytes()
    small_vmem = vmem_cap <= 80 * _MIB          # v7x-like (64 MiB VMEM)
    if tn is None:
        tn = 256 if small_vmem else 1024        # hidden tile (lane dim)
    tn = max(128, min(tn, _round_up(hidden, 128)))

    dim_pad = _round_up(dim, 128)
    H_pad = _round_up(hidden, tn)

    if dim_pad != dim or H_pad != hidden:
        # Zero gate/up columns and zero down rows contribute exactly 0.
        w1_t = jnp.pad(w1_t, ((0, dim_pad - dim), (0, H_pad - hidden)))
        w3_t = jnp.pad(w3_t, ((0, dim_pad - dim), (0, H_pad - hidden)))
        w2_t = jnp.pad(w2_t, ((0, H_pad - hidden), (0, dim_pad - dim)))

    nj = H_pad // tn
    w1r = w1_t.reshape(dim_pad, nj, 1, tn)
    w3r = w3_t.reshape(dim_pad, nj, 1, tn)
    wg = jnp.concatenate([w1r, w3r], axis=2).reshape(dim_pad, 2 * H_pad)

    return wg.astype(compute_dtype), w2_t.astype(compute_dtype), tn


# --------------------------------------------------------------------------
# Forward pass
# --------------------------------------------------------------------------
def feed_forward(x, wg, w2c, tn, *, tm=None, compute_dtype=jnp.bfloat16):
    """x: [..., dim]; (wg, w2c, tn) from prepare_ffn_weights()."""
    orig_shape = x.shape
    dim = orig_shape[-1]
    dim_pad, two_hpad = wg.shape
    H_pad = two_hpad // 2
    assert H_pad % tn == 0 and dim_pad % 128 == 0
    out_dtype = x.dtype

    x2d = x.reshape(-1, dim)
    M = x2d.shape[0]

    vmem_cap = _vmem_capacity_bytes()
    small_vmem = vmem_cap <= 80 * _MIB

    direct_acc = (out_dtype == jnp.float32)     # accumulate straight into o_ref
    out_itemsize = jnp.dtype(out_dtype).itemsize
    cdt_itemsize = jnp.dtype(compute_dtype).itemsize

    # ---- row tile selection -------------------------------------------------
    if tm is None:
        tm = 512 if small_vmem else 1024        # big tm -> weights re-streamed less
    tm = max(16, min(tm, _round_up(M, 16)))
    if small_vmem and M > 16:
        # v7x has 2 TensorCores: give the 'parallel' row axis >= 2 programs.
        tm = min(tm, _round_up((M + 1) // 2, 16))

    def working_set(tm_):
        ws = 2 * tm_ * dim_pad * cdt_itemsize           # x tile (double-buffered)
        ws += 2 * dim_pad * (2 * tn) * cdt_itemsize     # fused gate/up tile
        ws += 2 * tn * dim_pad * cdt_itemsize           # down-projection tile
        ws += 2 * tm_ * dim_pad * out_itemsize          # output tile
        if not direct_acc:
            ws += tm_ * dim_pad * 4                     # f32 accumulator scratch
        return ws

    budget = max(32 * _MIB, vmem_cap - 16 * _MIB)
    while working_set(tm) > budget and tm > 16:
        tm = max(16, _round_up(tm // 2, 16))

    M_pad = _round_up(M, tm)
    if M_pad != M or dim_pad != dim:
        x2d = jnp.pad(x2d, ((0, M_pad - M), (0, dim_pad - dim)))
    xc = x2d.astype(compute_dtype)

    grid = (M_pad // tm, H_pad // tn)
    n_row_tiles = grid[0]

    # ---- advisory cost estimate (weights re-streamed per row tile) ----------
    flops = 6 * M_pad * dim_pad * H_pad
    bytes_accessed = (int(xc.size) * cdt_itemsize
                      + n_row_tiles * (int(wg.size) + int(w2c.size)) * cdt_itemsize
                      + M_pad * dim_pad * out_itemsize)
    cost = pl.CostEstimate(flops=int(flops),
                           transcendentals=int(M_pad * H_pad),
                           bytes_accessed=int(bytes_accessed))

    vmem_limit = int(min(vmem_cap - 4 * _MIB,
                         max(32 * _MIB, working_set(tm) + 8 * _MIB)))

    in_specs = [
        pl.BlockSpec((tm, dim_pad), lambda i, j: (i, 0)),        # x row tile
        pl.BlockSpec((dim_pad, 2 * tn), lambda i, j: (0, j)),    # fused w1|w3 tile
        pl.BlockSpec((tn, dim_pad), lambda i, j: (j, 0)),        # w2 tile
    ]
    out_spec = pl.BlockSpec((tm, dim_pad), lambda i, j: (i, 0))

    if direct_acc:
        kernel = _ffn_kernel_accum_out
        scratch_shapes = []
    else:
        kernel = _ffn_kernel_scratch_acc
        scratch_shapes = [pltpu.VMEM((tm, dim_pad), jnp.float32)]

    out = pl.pallas_call(
        kernel,
        out_shape=jax.ShapeDtypeStruct((M_pad, dim_pad), out_dtype),
        grid_spec=pltpu.PrefetchScalarGridSpec(
            num_scalar_prefetch=0,
            grid=grid,
            in_specs=in_specs,
            out_specs=out_spec,
            scratch_shapes=scratch_shapes,
        ),
        compiler_params=pltpu.CompilerParams(
            dimension_semantics=("parallel", "arbitrary"),
            vmem_limit_bytes=vmem_limit),
        cost_estimate=cost,
    )(xc, wg, w2c)

    out = out[:M, :dim]
    return out.reshape(orig_shape)


def compute_hidden_dim(dim, hidden_dim, multiple_of, ffn_dim_multiplier=None):
    hidden_dim = int(2 * hidden_dim / 3)
    if ffn_dim_multiplier is not None:
        hidden_dim = int(ffn_dim_multiplier * hidden_dim)
    return multiple_of * ((hidden_dim + multiple_of - 1) // multiple_of)


if __name__ == "__main__":
    # Small, lane-friendly config consistent with the PyTorch __init__.
    dim = 128
    hidden_dim_arg = 512
    multiple_of = 128
    hidden = compute_hidden_dim(dim, hidden_dim_arg, multiple_of, None)  # = 384

    batch, seq = 2, 16

    key = jax.random.PRNGKey(0)
    kx, k1, k2, k3 = jax.random.split(key, 4)
    x = jax.random.normal(kx, (batch, seq, dim), dtype=jnp.float32)

    # Deterministic parameter init (Kaiming-uniform-ish, like nn.Linear default),
    # stored transposed relative to PyTorch: (in_features, out_features).
    def init_linear(k, fan_in, fan_out):
        bound = 1.0 / math.sqrt(fan_in)
        return jax.random.uniform(k, (fan_in, fan_out), jnp.float32,
                                  minval=-bound, maxval=bound)

    w1_t = init_linear(k1, dim, hidden)   # torch w1: (hidden, dim) -> (dim, hidden)
    w3_t = init_linear(k3, dim, hidden)
    w2_t = init_linear(k2, hidden, dim)   # torch w2: (dim, hidden) -> (hidden, dim)

    # One-time weight prep (fuse gate/up, pad, cast to bf16) — off the hot path.
    wg, w2c, tn = prepare_ffn_weights(w1_t, w3_t, w2_t)

    out = feed_forward(x, wg, w2c, tn)
    out = jax.block_until_ready(out)
    assert out.shape == (batch, seq, dim)

    # Reference 1: same bf16 matmul inputs / f32 accumulation (tight check).
    xb = x.astype(jnp.bfloat16)
    x1 = jnp.einsum('bsd,dh->bsh', xb, w1_t.astype(jnp.bfloat16),
                    preferred_element_type=jnp.float32)
    x3 = jnp.einsum('bsd,dh->bsh', xb, w3_t.astype(jnp.bfloat16),
                    preferred_element_type=jnp.float32)
    h = (x1 * jax.nn.sigmoid(x1)) * x3
    ref_bf16 = jnp.einsum('bsh,hd->bsd', h.astype(jnp.bfloat16),
                          w2_t.astype(jnp.bfloat16),
                          preferred_element_type=jnp.float32).astype(x.dtype)
    assert jnp.allclose(out, ref_bf16, atol=2e-2, rtol=2e-2)

    # Reference 2: full f32 semantics (loose check — MXU inputs are bf16).
    x1f = x @ w1_t
    x3f = x @ w3_t
    ref_f32 = ((x1f * jax.nn.sigmoid(x1f)) * x3f) @ w2_t
    assert jnp.allclose(out, ref_f32, atol=1e-1, rtol=1e-1)

    print("KERNEL_OK")
</pallas_src>

<mosaic_0001>
module attributes {stable_mosaic.version = 11 : i64} {
  func.func @_ffn_kernel_accum_out(%arg0: i32, %arg1: i32, %arg2: memref<16x128xbf16, #tpu.memory_space<vmem>>, %arg3: memref<128x512xbf16, #tpu.memory_space<vmem>>, %arg4: memref<256x128xbf16, #tpu.memory_space<vmem>>, %arg5: memref<16x128xf32, #tpu.memory_space<vmem>>) attributes {dimension_semantics = [#tpu.dimension_semantics<parallel>, #tpu.dimension_semantics<arbitrary>], iteration_bounds = array<i64: 2, 2>, scalar_prefetch = 0 : i64, scratch_operands = 0 : i64, tpu.core_type = #tpu.core_type<tc>, window_params = [{transform_indices = @transform_0, window_bounds = array<i64: 16, 128>}, {transform_indices = @transform_1, window_bounds = array<i64: 128, 512>}, {transform_indices = @transform_2, window_bounds = array<i64: 256, 128>}, {transform_indices = @transform_3, window_bounds = array<i64: 16, 128>}]} {
    %c0_i32 = arith.constant 0 : i32
    %0 = arith.cmpi eq, %arg1, %c0_i32 : i32
    %1 = arith.extui %0 : i1 to i32
    %c0_i32_0 = arith.constant 0 : i32
    %2 = arith.cmpi ne, %1, %c0_i32_0 : i32
    scf.if %2 {
      %cst_12 = arith.constant 0.000000e+00 : f32
      %21 = vector.broadcast %cst_12 : f32 to vector<16x128xf32>
      %c0_13 = arith.constant 0 : index
      %c0_14 = arith.constant 0 : index
      %22 = vector.load %arg5[%c0_13, %c0_14] : memref<16x128xf32, #tpu.memory_space<vmem>>, vector<16x128xf32>
      tpu.vector_store %arg5[%c0_13, %c0_14], %21 {strides = array<i32>} : memref<16x128xf32, #tpu.memory_space<vmem>>, vector<16x128xf32>,
    } else {
    }
    %c0 = arith.constant 0 : index
    %c0_1 = arith.constant 0 : index
    %3 = vector.load %arg2[%c0, %c0_1] : memref<16x128xbf16, #tpu.memory_space<vmem>>, vector<16x128xbf16>
    %c0_2 = arith.constant 0 : index
    %c0_3 = arith.constant 0 : index
    %4 = vector.load %arg3[%c0_2, %c0_3] : memref<128x512xbf16, #tpu.memory_space<vmem>>, vector<128x512xbf16>
    %cst = arith.constant dense<0.000000e+00> : vector<16x512xf32>
    %5 = tpu.matmul %3, %4, %cst {dimension_numbers = #tpu.dot_dimension_numbers<[1], [0], [0], [1], [0, 0, 1, 1], [], []>} : vector<16x128xbf16>, vector<128x512xbf16>, vector<16x512xf32> -> vector<16x512xf32>
    %6 = vector.extract_strided_slice %5 {offsets = [0, 0], sizes = [16, 256], strides = [1, 1]} : vector<16x512xf32> to vector<16x256xf32>
    %7 = vector.extract_strided_slice %5 {offsets = [0, 256], sizes = [16, 256], strides = [1, 1]} : vector<16x512xf32> to vector<16x256xf32>
    %8 = arith.negf %6 : vector<16x256xf32>
    %9 = math.exp %8 : vector<16x256xf32>
    %cst_4 = arith.constant 1.000000e+00 : f32
    %10 = vector.broadcast %cst_4 : f32 to vector<16x256xf32>
    %11 = arith.addf %10, %9 : vector<16x256xf32>
    %12 = arith.divf %10, %11 : vector<16x256xf32>
    %13 = arith.mulf %6, %12 : vector<16x256xf32>
    %14 = arith.mulf %13, %7 : vector<16x256xf32>
    %c0_5 = arith.constant 0 : index
    %c0_6 = arith.constant 0 : index
    %15 = vector.load %arg5[%c0_5, %c0_6] : memref<16x128xf32, #tpu.memory_space<vmem>>, vector<16x128xf32>
    %16 = arith.truncf %14 : vector<16x256xf32> to vector<16x256xbf16>
    %c0_7 = arith.constant 0 : index
    %c0_8 = arith.constant 0 : index
    %17 = vector.load %arg4[%c0_7, %c0_8] : memref<256x128xbf16, #tpu.memory_space<vmem>>, vector<256x128xbf16>
    %cst_9 = arith.constant dense<0.000000e+00> : vector<16x128xf32>
    %18 = tpu.matmul %16, %17, %cst_9 {dimension_numbers = #tpu.dot_dimension_numbers<[1], [0], [0], [1], [0, 0, 1, 1], [], []>} : vector<16x256xbf16>, vector<256x128xbf16>, vector<16x128xf32> -> vector<16x128xf32>
    %19 = arith.addf %15, %18 : vector<16x128xf32>
    %c0_10 = arith.constant 0 : index
    %c0_11 = arith.constant 0 : index
    %20 = vector.load %arg5[%c0_10, %c0_11] : memref<16x128xf32, #tpu.memory_space<vmem>>, vector<16x128xf32>
    tpu.vector_store %arg5[%c0_10, %c0_11], %19 {strides = array<i32>} : memref<16x128xf32, #tpu.memory_space<vmem>>, vector<16x128xf32>,
    return
  }
  func.func @transform_0(%arg0: i32, %arg1: i32) -> (i32, i32) {
    %c0_i32 = arith.constant 0 : i32
    %c0_i32_0 = arith.constant 0 : i32
    return %arg0, %c0_i32 : i32, i32
  }
  func.func @transform_1(%arg0: i32, %arg1: i32) -> (i32, i32) {
    %c0_i32 = arith.constant 0 : i32
    %c0_i32_0 = arith.constant 0 : i32
    return %c0_i32, %arg1 : i32, i32
  }
  func.func @transform_2(%arg0: i32, %arg1: i32) -> (i32, i32) {
    %c0_i32 = arith.constant 0 : i32
    %c0_i32_0 = arith.constant 0 : i32
    return %arg1, %c0_i32 : i32, i32
  }
  func.func @transform_3(%arg0: i32, %arg1: i32) -> (i32, i32) {
    %c0_i32 = arith.constant 0 : i32
    %c0_i32_0 = arith.constant 0 : i32
    return %arg0, %c0_i32 : i32, i32
  }
}

</mosaic_0001>

<bundles_post_ra>
// kernel: tpu_custom_call.1
= control target key start
LH: loop header
LB: loop body
LE: loop exit
PB: predicated region body
PF: predicated region fallthrough
CT: control target
= control target key end

     0   :  { %s1816_s0 = inlined_call_operand.hbm [shape: bf16[32,128], index: 0, kind: input, shape index: {}]   ;;  %s1817_s1 = inlined_call_operand.hbm [shape: bf16[128,1024], index: 1, kind: input, shape index: {}]   ;;  %s1818_s2 = inlined_call_operand.hbm [shape: bf16[512,128], index: 2, kind: input, shape index: {}]   ;;  %s1819_s3 = inlined_call_operand.hbm [shape: f32[32,128], index: 3, kind: output, shape index: {}]  }
   0x1   :  { %1832 = sst [smem:[#allocation21_spill]] %s1816_s0 }
   0x2   :  { %1833 = sst [smem:[#allocation22_spill]] %s1817_s1 }
   0x3   :  { %1834 = sst [smem:[#allocation23_spill]] %s1819_s3 }
   0x4   :  { %8 = vsyncpa [#allocation3], 0 }
   0x5   :  { %10 = vsyncpa [#allocation3 + $0x1], 0 }
   0x6   :  { %11 = vsyncpa [#allocation6], 0 }
   0x7   :  { %13 = vsyncpa [#allocation6 + $0x1], 0 }
   0x8   :  { %14 = vsyncpa [#allocation4], 0 }
   0x9   :  { %16 = vsyncpa [#allocation4 + $0x1], 0  ;;  %s1473_s12 = smov 0   ;;  %s1475_s13 = smov 0  }
   0xa   :  { %s1477_s14 = smov 0   ;;  %s1479_s15 = smov 0  }
   0xb   :  { %s1481_s16 = smov 0   ;;  %s1483_s17 = smov 0  }
   0xc   :  { %s1485_s18 = smov 0   ;;  %s1487_s19 = smov 0  }
   0xd   :  { %s1489_s20 = smov 0   ;;  %s1491_s21 = smov 0  }
   0xe   :  { %s1493_s22 = smov 0  }
   0xf LB: > { %1835 = sst [smem:[#allocation12_spill]] %s1406_s14  ;;  %s31_s23 = sadd.s32 1, %s1430_s20  ;;  %s1438_s22 = sphi %s1493_s22, %s22_s22   ;;  %s1434_s21 = sphi %s1491_s21, %s1868_s21   ;;  %s1430_s20 = sphi %s1489_s20, %s1874_s20   ;;  %s1426_s19 = sphi %s1487_s19, %s1866_s19   ;;  %s1422_s18 = sphi %s1485_s18, %s1873_s18   ;;  %s1418_s17 = sphi %s1483_s17, %s1865_s17   ;;  %s1414_s16 = sphi %s1481_s16, %s1872_s16   ;;  %s1410_s15 = sphi %s1479_s15, %s1871_s15   ;;  %s1406_s14 = sphi %s1477_s14, %s1863_s14   ;;  %s1402_s13 = sphi %s1475_s13, %s1870_s13   ;;  %s1398_s12 = sphi %s1473_s12, %s1869_s12  }
  0x10   : > { %1836 = sst [smem:[#allocation13_spill]] %s1418_s17  ;;  %p49_p0 = scmp.eq.s32.totalorder %s1438_s22, 0 }
  0x11   : > { %1837 = sst [smem:[#allocation14_spill]] %s1434_s21  ;;  %p1530_p1 = scmp.ge.s32.totalorder %s31_s23, 2 }
  0x12   : > { %s67_s25 = sadd.s32 1, %s1406_s14  ;;  %p74_p2 = scmp.ne.s32.totalorder %s1406_s14, %s1402_s13 }
  0x13   : > { %p80_p3 = scmp.ne.s32.totalorder %s1402_s13, %s1398_s12  ;;  %s1876_s23 = smov (%p1530_p1, %s31_s23), 0 }
  0x14   : > { %1839 = sst [smem:[#allocation15_spill]] %s1876_s23  ;;  %p76_p4 = por %p74_p2, %p49_p0 }
  0x15   : > { %s64_s26 = ssub.s32 %s1430_s20, %s1876_s23  ;;  %p1822_p5 = scmp.lt.s32.totalorder %s1438_s22, 4 }
  0x16   : > { %p65_p6 = scmp.eq.s32.totalorder %s64_s26, 0  ;;  %s177_s27 = sand.u32 1, %s1438_s22  }
  0x17   : > { %s1821_s28 = sand.u32 1, %s1406_s14   ;;  %s1003_s4 = sshll.u32 %s1430_s20, 8 }
  0x18   : > { %s1551_s29 = scalar_select %p65_p6, %s1406_s14, %s67_s25  }
  0x19   : > { %s932_s30 = sshll.u32 %s1821_s28, 8  ;;  %s1841_s1 = sld [smem:[#allocation22_spill]] }
  0x1a   : > { %1840 = sst [smem:[#allocation16_spill]] %s1551_s29  ;;  %s181_s8 = scalar_lea.vmem [#allocation5], %s932_s30 }
  0x1b   : > { %s188_s9 = sshll.u32 %s181_s8, 4  ;;  %p1561_p7 = pnand %p1822_p5, %p76_p4  ;;  %s189_s9 = int_to_ptr.vmem [resolvable:$true] %s188_s9 }
  0x1c   : > { %p938_p8 = scmp.ge.s32.totalorder %s1438_s22, 1  ;;  %s1566_s11 = scalar_lea.sflag [#allocation6], %s177_s27 }
  0x1d   : > { %p1820_p9 = pneg %p1561_p7  ;;  %s1243_s25 = scalar_lea.vmem %s189_s9, 4096 }
  0x1e   : > { %p1244_p10 = scmp.ne.s32.totalorder %s189_s9, %s1243_s25  ;;  %s1440_s26 = smov [#allocation5]  }
  0x1f   : > { %s187_s7 = scalar_lea.hbm %s1841_s1, %s1003_s4  ;;  %s1248_s30 = sshll.u32 %s1440_s26, 4  ;;  %s1249_s30 = int_to_ptr.vmem [resolvable:$false] %s1248_s30 }
  0x20   : > { %p1246_p11 = pnand %p1244_p10, %p1820_p9  ;;  %s1250_s4 = scalar_lea.vmem %s1249_s30, 8192 }
  0x21   : > { %p1251_p13 = scmp.lt.s32.totalorder %s189_s9, %s1249_s30  ;;  %p1252_p2 = scmp.lt.s32.totalorder %s1250_s4, %s1243_s25 }
  0x22   : > { %p1247_p12 = pneg %p1246_p11 }
  0x23   : > { %p1253_p4 = por %p1252_p2, %p1251_p13 }
  0x25   : > { %p1254_p6 = pnand %p1253_p4, %p1247_p12 }
  0x27   : > { %1257 = shalt.err (!%p1254_p6)
}
  0x28   : > { %s1441_s5 = smov 512   ;;  %s1442_s27 = smov 256  }
  0x29   : > { %s1443_s6 = smov 16   ;;  %p217_p10 = scmp.lt.s32.totalorder %s1438_s22, 5 }
  0x2a   : > { %1042 = dma.hbm_to_vmem [thread:$0]  (!%p1561_p7), %s187_s7, 4096, %s189_s9, %s1566_s11, %s1441_s5, %s1442_s27, %s1443_s6  }
  0x2b   : > { %p1579_p11 = pnand %p938_p8, %p217_p10  ;;  %s1584_s25 = sadd.s32 4294967295, %s1438_s22  }
  0x2c   : > { %s926_s26 = sadd.s32 4294967294, %s1438_s22   ;;  %s34_s30 = sadd.s32 1, %s1434_s21 }
  0x2d   : > { %s41_s4 = sadd.s32 1, %s1418_s17  ;;  %s1878_s30 = smov (!%p1530_p1, %s34_s30), %s1434_s21 }
  0x2e   : > { %p48_p12 = scmp.ne.s32.totalorder %s1418_s17, %s1414_s16  ;;  %p54_p13 = scmp.ne.s32.totalorder %s1414_s16, %s1410_s15 }
  0x2f   : > { %p36_p8 = scmp.ge.s32.totalorder %s1878_s30, 2  ;;  %p55_p2 = scmp.eq.s32.totalorder %s1584_s25, 0 }
  0x30   : > { %p1599_p4 = por %p49_p0, %p48_p12  ;;  %p130_p6 = scmp.eq.s32.totalorder %s1584_s25, 3 }
  0x31   : > { %s1880_s30 = smov (%p36_p8, %s1878_s30), 0  ;;  %p1609_p1 = por %p55_p2, %p54_p13 }
  0x32   : > { %1845 = sst [smem:[#allocation17_spill]] %s1880_s30  ;;  %p1616_p10 = por %p80_p3, %p55_p2 }
  0x33   : > { %s38_s5 = ssub.s32 %s1434_s21, %s1880_s30  ;;  %p1622_p0 = por %p130_p6, %p48_p12 }
  0x34   : > { %p39_p9 = scmp.eq.s32.totalorder %s38_s5, 0  ;;  %p136_p8 = scmp.eq.s32.totalorder %s926_s26, 3 }
  0x35   : > { %s1848_s27 = scalar_select %p1622_p0, 1, 0 }
  0x36   : > { %s156_s6 = sand.u32 1, %s1418_s17   ;;  %s1002_s28 = sshll.u32 %s1434_s21, 7 }
  0x37   : > { %1849 = sst [smem:[#allocation18_spill]] %s1848_s27  ;;  %p1634_p5 = por %p136_p8, %p54_p13 }
  0x38   : > { %s1629_s1 = scalar_select %p39_p9, %s1418_s17, %s41_s4  }
  0x39   : > { %s1851_s23 = scalar_select %p1634_p5, 1, 0 }
  0x3a   : > { %1850 = sst [smem:[#allocation19_spill]] %s1629_s1  ;;  %s929_s12 = sshll.u32 %s156_s6, 3 }
  0x3b   : > { %1852 = sst [smem:[#allocation20_spill]] %s1851_s23  ;;  %p1854_p3 = scmp.lt.s32.totalorder %s1438_s22, 4 }
  0x3c   : > { %s1853_s0 = sld [smem:[#allocation21_spill]]  ;;  %s160_s26 = scalar_lea.vmem [#allocation2], %s929_s12 }
  0x3d   : > { %p1645_p12 = pnand %p1854_p3, %p1599_p4  ;;  %s167_s4 = sshll.u32 %s160_s26, 4  ;;  %s168_s4 = int_to_ptr.vmem [resolvable:$true] %s167_s4 }
  0x3e   : > { %s1856_s5 = sand.u32 1, %s1406_s14   ;;  %s157_s1 = scalar_lea.sflag [#allocation3], %s156_s6 }
  0x3f   : > { %s935_s21 = sshll.u32 %s1856_s5, 7  ;;  %p1260_p9 = pneg %p1645_p12 }
  0x40   : > { %s1271_s17 = scalar_lea.vmem %s168_s4, 128  ;;  %s1444_s3 = smov [#allocation2]  }
  0x41   : > { %p1272_p13 = scmp.ne.s32.totalorder %s168_s4, %s1271_s17 }
  0x42   : > { %s166_s30 = scalar_lea.hbm %s1853_s0, %s1002_s28  ;;  %s1276_s28 = sshll.u32 %s1444_s3, 4  ;;  %s1277_s28 = int_to_ptr.vmem [resolvable:$false] %s1276_s28 }
  0x43   : > { %p1274_p2 = pnand %p1272_p13, %p1260_p9  ;;  %s1278_s29 = scalar_lea.vmem %s1277_s28, 256 }
  0x44   : > { %p1279_p4 = scmp.lt.s32.totalorder %s168_s4, %s1277_s28  ;;  %p1280_p8 = scmp.lt.s32.totalorder %s1278_s29, %s1271_s17 }
  0x45   : > { %p1275_p6 = pneg %p1274_p2 }
  0x46   : > { %p1281_p3 = por %p1280_p8, %p1279_p4 }
  0x48   : > { %p1282_p5 = pnand %p1281_p3, %p1275_p6 }
  0x4a   : > { %1285 = shalt.err (!%p1282_p5)
}
  0x4b   : > { %s1445_s7 = smov 64   ;;  %s1446_s6 = smov 4  }
  0x4c   : > { %1039 = dma.hbm_to_vmem [thread:$0]  (!%p1645_p12), %s166_s30, 128, %s168_s4, %s157_s1, %s1445_s7, %s1445_s7, %s1446_s6  }
  0x4d   : > { %s1004_s12 = sshll.u32 %s1430_s20, 11  ;;  %s202_s3 = scalar_lea.vmem [#allocation7], %s935_s21 }
  0x4e   : > { %s208_s0 = scalar_lea.hbm %s1818_s2, %s1004_s12  ;;  %s209_s14 = sshll.u32 %s202_s3, 4  ;;  %s210_s14 = int_to_ptr.vmem [resolvable:$true] %s209_s14 }
  0x4f   : > { %s1299_s28 = scalar_lea.vmem %s210_s14, 2048  ;;  %p1857_p13 = pneg %p1561_p7 }
  0x50   : > { %p1300_p9 = scmp.ne.s32.totalorder %s210_s14, %s1299_s28  ;;  %s1447_s17 = smov [#allocation7]  }
  0x51   : > { %s1304_s29 = sshll.u32 %s1447_s17, 4  ;;  %s1305_s29 = int_to_ptr.vmem [resolvable:$false] %s1304_s29 }
  0x52   : > { %p1302_p5 = pnand %p1300_p9, %p1857_p13  ;;  %s1306_s23 = scalar_lea.vmem %s1305_s29, 4096 }
  0x53   : > { %p1307_p6 = scmp.lt.s32.totalorder %s210_s14, %s1305_s29  ;;  %p1308_p12 = scmp.lt.s32.totalorder %s1306_s23, %s1299_s28 }
  0x54   : > { %p1303_p2 = pneg %p1302_p5 }
  0x55   : > { %p1309_p4 = por %p1308_p12, %p1307_p6 }
  0x57   : > { %p1310_p8 = pnand %p1309_p4, %p1303_p2 }
  0x59   : > { %1313 = shalt.err (!%p1310_p8)
}
  0x5a   : > { %1045 = dma.hbm_to_vmem [thread:$0]  (!%p1561_p7), %s208_s0, 2048, %s210_s14, %s1566_s11, %s1445_s7, %s1445_s7, %s1446_s6  }
  0x5b   : > { %221 = sbr.rel (%p1579_p11) target bundleno = 601 (0x259), region = 32  ;;  %s1668_s1 = sand.u32 (!%p1579_p11), 1, %s1414_s16  }
  0x5c   : > { %s939_s21 = sshll.u32 (!%p1579_p11), %s1668_s1, 3  ;;  %s224_s30 = scalar_lea.sflag (!%p1579_p11), [#allocation3], %s1668_s1 }
  0x5d   : > { %s1672_s27 = scalar_lea.vmem (!%p1579_p11), [#allocation2], %s939_s21 }
  0x60   : > { %1385 = dma.done.wait (%p1609_p1), %s224_s30, 128  }
  0x61   : > { %1387 = vsyncadd (%p1609_p1), %s224_s30, 4294967168  ;;  %s232_s0 = sand.u32 1, %s1584_s25   ;;  %s234_s14 = sand.u32 1, %s1402_s13  }
  0x62   : > { %s940_s23 = sshll.u32 %s234_s14, 8  ;;  %s233_s10 = scalar_lea.sflag [#allocation6], %s232_s0 }
  0x63   : > { %s1680_s11 = scalar_lea.vmem [#allocation5], %s940_s23 }
  0x64   : > { %1389 = dma.done.wait (%p1616_p10), %s233_s10, 6144  }
  0x65   : > { %1391 = vsyncadd (%p1616_p10), %s233_s10, 4294961152  ;;  %s941_s8 = sshll.u32 %s234_s14, 7  ;;  %s942_s4 = sshll.u32 %s1668_s1, 4 }
  0x66   : > { %s1687_s7 = scalar_lea.vmem [#allocation7], %s941_s8  ;;  %s1689_s24 = scalar_lea.vmem [#allocation8], %s942_s4 }
  0x67   : > { %p943_p7 = scmp.ne.s32.totalorder %s1422_s18, 0 }
  0x69   : > { %286 = sbr.rel (%p943_p7) target bundleno = 112 (0x70), region = 48 }
  0x6e   : > { %v1448_v0 = vmov 0.0  }
  0x6f   : > { %287 = vst [vmem:[%s1689_s24] sm:$0xff] %v1448_v0  ;;  %288 = vst [vmem:[%s1689_s24 + $0x8] sm:$0xff] %v1448_v0 }
  0x70 PF: > { %v1149_v1 = vld [vmem:[%s1680_s11 + $0xe4] ss:$16 sps:$4 sm:$0xff]   ;;  %v1151_v2 = vld [vmem:[%s1680_s11 + $0xe0] ss:$16 sps:$4 sm:$0xff]   ;;  %v1449_v3 = vmov 0   ;;  %v1198_v35 = vld [vmem:[%s1687_s7 + $0x78] sm:$0xff]  }
  0x71   : > { %521 = vmatprep.mubr.bf16.mxu0 %v1449_v3  ;;  %564 = vmatprep.mubr.bf16.mxu1 %v1449_v3  ;;  %v1152_v4 = vld [vmem:[%s1680_s11 + $0xc4] ss:$16 sps:$4 sm:$0xff]   ;;  %v1154_v5 = vld [vmem:[%s1680_s11 + $0xc0] ss:$16 sps:$4 sm:$0xff]   ;;  %v1172_v10 = vld [vmem:[%s1680_s11 + $0xec] ss:$16 sps:$4 sm:$0xff]  }
  0x72   : > { %489 = vmatprep.subr.bf16.mxu0 %v1149_v1  ;;  %v1155_v6 = vld [vmem:[%s1680_s11 + $0xa4] ss:$16 sps:$4 sm:$0xff]   ;;  %v1157_v7 = vld [vmem:[%s1680_s11 + $0xa0] ss:$16 sps:$4 sm:$0xff]   ;;  %v1175_v11 = vld [vmem:[%s1680_s11 + $0xe8] ss:$16 sps:$4 sm:$0xff]   ;;  %532 = vmatprep.subr.bf16.mxu1 %v1172_v10 }
  0x73   : > { %490 = vmatpush1.bf16.msra.mxu0 %v1151_v2  ;;  %v1158_v8 = vld [vmem:[%s1680_s11 + $0x84] ss:$16 sps:$4 sm:$0xff]   ;;  %v1160_v9 = vld [vmem:[%s1680_s11 + $0x80] ss:$16 sps:$4 sm:$0xff]   ;;  %v1177_v13 = vld [vmem:[%s1680_s11 + $0xcc] ss:$16 sps:$4 sm:$0xff]   ;;  %533 = vmatpush1.bf16.msra.mxu1 %v1175_v11 }
  0x74   : > { %491 = vmatprep.subr.bf16.mxu0 %v1152_v4  ;;  %v1161_v12 = vld [vmem:[%s1680_s11 + $0x64] ss:$16 sps:$4 sm:$0xff]   ;;  %v1179_v14 = vld [vmem:[%s1680_s11 + $0xc8] ss:$16 sps:$4 sm:$0xff]   ;;  %v1163_v15 = vld [vmem:[%s1680_s11 + $0x60] ss:$16 sps:$4 sm:$0xff]   ;;  %534 = vmatprep.subr.bf16.mxu1 %v1177_v13 }
  0x75   : > { %v1180_v16 = vld [vmem:[%s1680_s11 + $0xac] ss:$16 sps:$4 sm:$0xff]   ;;  %v1164_v17 = vld [vmem:[%s1680_s11 + $0x44] ss:$16 sps:$4 sm:$0xff]   ;;  %v1182_v18 = vld [vmem:[%s1680_s11 + $0xa8] ss:$16 sps:$4 sm:$0xff]  }
  0x76   : > { %v1166_v19 = vld [vmem:[%s1680_s11 + $0x40] ss:$16 sps:$4 sm:$0xff]   ;;  %v1183_v20 = vld [vmem:[%s1680_s11 + $0x8c] ss:$16 sps:$4 sm:$0xff]   ;;  %v1167_v21 = vld [vmem:[%s1680_s11 + $0x24] ss:$16 sps:$4 sm:$0xff]  }
  0x77   : > { %492 = vmatpush1.bf16.msra.mxu0 %v1154_v5  ;;  %535 = vmatpush1.bf16.msra.mxu1 %v1179_v14  ;;  %v1169_v22 = vld [vmem:[%s1680_s11 + $0x20] ss:$16 sps:$4 sm:$0xff]   ;;  %v1185_v23 = vld [vmem:[%s1680_s11 + $0x88] ss:$16 sps:$4 sm:$0xff]   ;;  %v1170_v24 = vld [vmem:[%s1680_s11 + $0x4] ss:$16 sps:$4 sm:$0xff]  }
  0x78   : > { %493 = vmatprep.subr.bf16.mxu0 %v1155_v6  ;;  %536 = vmatprep.subr.bf16.mxu1 %v1180_v16  ;;  %v1186_v25 = vld [vmem:[%s1680_s11 + $0x6c] ss:$16 sps:$4 sm:$0xff]   ;;  %v1188_v26 = vld [vmem:[%s1680_s11 + $0x68] ss:$16 sps:$4 sm:$0xff]   ;;  %v1174_v27 = vld [vmem:[%s1680_s11] ss:$16 sps:$4 sm:$0xff]  }
  0x79   : > { %v1189_v28 = vld [vmem:[%s1680_s11 + $0x4c] ss:$16 sps:$4 sm:$0xff]   ;;  %v1191_v30 = vld [vmem:[%s1680_s11 + $0x48] ss:$16 sps:$4 sm:$0xff]   ;;  %v1200_v37 = vld [vmem:[%s1687_s7 + $0x70] sm:$0xff]   ;;  %s1005_s25 = sshll.u32 %s1426_s19, 8 }
  0x7a   : > { %v1176_v29 = vld [vmem:[%s1672_s27] sm:$0xff]   ;;  %v1202_v39 = vld [vmem:[%s1687_s7 + $0x68] sm:$0xff]   ;;  %v1204_v41 = vld [vmem:[%s1687_s7 + $0x60] sm:$0xff]   ;;  %s798_s9 = sshll.u32 %s1689_s24, 4  ;;  %s1859_s26 = sld [smem:[#allocation23_spill]]  ;;  %s1753_s9 = int_to_ptr.vmem [resolvable:$true] %s798_s9 }
  0x7b   : > { %494 = vmatpush1.bf16.msra.mxu0 %v1157_v7  ;;  %537 = vmatpush1.bf16.msra.mxu1 %v1182_v18  ;;  %v1192_v31 = vld [vmem:[%s1680_s11 + $0x2c] ss:$16 sps:$4 sm:$0xff]   ;;  %v1194_v32 = vld [vmem:[%s1680_s11 + $0x28] ss:$16 sps:$4 sm:$0xff]   ;;  %v1201_v38 = vld [vmem:[%s1687_s7 + $0x30] sm:$0xff]   ;;  %s785_s3 = scalar_lea.sflag [#allocation4], %s1668_s1 }
  0x7c   : > { %495 = vmatprep.subr.bf16.mxu0 %v1158_v8  ;;  %538 = vmatprep.subr.bf16.mxu1 %v1183_v20  ;;  %v1195_v33 = vld [vmem:[%s1680_s11 + $0xc] ss:$16 sps:$4 sm:$0xff]   ;;  %v1197_v34 = vld [vmem:[%s1680_s11 + $0x8] ss:$16 sps:$4 sm:$0xff]   ;;  %v1205_v42 = vld [vmem:[%s1687_s7 + $0x20] sm:$0xff]   ;;  %s1314_s28 = scalar_lea.vmem %s1753_s9, 256 }
  0x7d   : > { %v1199_v36 = vld [vmem:[%s1687_s7 + $0x38] sm:$0xff]   ;;  %v1203_v40 = vld [vmem:[%s1687_s7 + $0x28] sm:$0xff]   ;;  %v1208_v45 = vld [vmem:[%s1687_s7 + $0x50] sm:$0xff]   ;;  %p1315_p11 = scmp.ne.s32.totalorder %s1753_s9, %s1314_s28  ;;  %s1450_s19 = smov [#allocation8]  }
  0x7e   : > { %v1206_v43 = vld [vmem:[%s1687_s7 + $0x58] sm:$0xff]   ;;  %v1209_v46 = vld [vmem:[%s1687_s7 + $0x10] sm:$0xff]   ;;  %v1210_v47 = vld [vmem:[%s1687_s7 + $0x48] sm:$0xff]   ;;  %s1318_s17 = sshll.u32 %s1450_s19, 4  ;;  %s1319_s17 = int_to_ptr.vmem [resolvable:$false] %s1318_s17 }
  0x7f   : > { %496 = vmatpush1.bf16.msra.mxu0 %v1160_v9  ;;  %539 = vmatpush1.bf16.msra.mxu1 %v1185_v23  ;;  %v1207_v44 = vld [vmem:[%s1687_s7 + $0x18] sm:$0xff]   ;;  %v1211_v48 = vld [vmem:[%s1687_s7 + $0x8] sm:$0xff]   ;;  %v1212_v49 = vld [vmem:[%s1687_s7 + $0x40] sm:$0xff]   ;;  %p1316_p1 = pnand %p1315_p11, %p1622_p0  ;;  %s1320_s29 = scalar_lea.vmem %s1319_s17, 512 }
  0x80   : > { %497 = vmatprep.subr.bf16.mxu0 %v1161_v12  ;;  %540 = vmatprep.subr.bf16.mxu1 %v1186_v25  ;;  %v1213_v50 = vld [vmem:[%s1687_s7] sm:$0xff]   ;;  %s1751_s5 = scalar_lea.hbm %s1859_s26, %s1005_s25  ;;  %p1321_p3 = scmp.lt.s32.totalorder %s1753_s9, %s1319_s17 }
  0x81   : > { %p1317_p10 = pneg %p1316_p1  ;;  %p1322_p9 = scmp.lt.s32.totalorder %s1320_s29, %s1314_s28 }
  0x83   : > { %498 = vmatpush1.bf16.msra.mxu0 %v1163_v15  ;;  %541 = vmatpush1.bf16.msra.mxu1 %v1188_v26  ;;  %p1323_p13 = por %p1322_p9, %p1321_p3 }
  0x84   : > { %499 = vmatprep.subr.bf16.mxu0 %v1164_v17  ;;  %542 = vmatprep.subr.bf16.mxu1 %v1189_v28 }
  0x85   : > { %p1324_p5 = pnand %p1323_p13, %p1317_p10 }
  0x87   : > { %500 = vmatpush1.bf16.msra.mxu0 %v1166_v19  ;;  %543 = vmatpush1.bf16.msra.mxu1 %v1191_v30 }
  0x88   : > { %501 = vmatprep.subr.bf16.mxu0 %v1167_v21  ;;  %544 = vmatprep.subr.bf16.mxu1 %v1192_v31 }
  0x8b   : > { %502 = vmatpush1.bf16.msra.mxu0 %v1169_v22  ;;  %545 = vmatpush1.bf16.msra.mxu1 %v1194_v32  ;;  %v607_v22 = vld [vmem:[%s1689_s24] sm:$0xff] }
  0x8c   : > { %503 = vmatprep.subr.bf16.mxu0 %v1170_v24  ;;  %546 = vmatprep.subr.bf16.mxu1 %v1195_v33 }
  0x8f   : > { %504 = vmatpush1.bf16.msra.mxu0 %v1174_v27  ;;  %547 = vmatpush1.bf16.msra.mxu1 %v1197_v34  ;;  %v608_v27 = vld [vmem:[%s1689_s24 + $0x8] sm:$0xff] }
  0x90   : > { %1006 = vmatprep.subr.bf16.mxu0 %v1198_v35 }
  0x92   : > { %522 = vmatmul.mubr.bf16.vlgmr.msra.gmra.mxu0 %v1176_v29  ;;  %565 = vmatmul.mubr.bf16.vlgmr.msra.gmra.mxu1 %v1176_v29 }
  0x93   : > { %1007 = vmatpush3.bf16.msra.mxu0 %v1199_v36 }
  0x94   : > { %1008 = vmatprep.subr.bf16.mxu0 %v1200_v37 }
  0x97   : > { %1009 = vmatpush3.bf16.msra.mxu0 %v1201_v38 }
  0x98   : > { %1010 = vmatprep.subr.bf16.mxu0 %v1202_v39 }
  0x9b   : > { %1011 = vmatpush3.bf16.msra.mxu0 %v1203_v40 }
  0x9c   : > { %1012 = vmatprep.subr.bf16.mxu0 %v1204_v41 }
  0x9f   : > { %1013 = vmatpush3.bf16.msra.mxu0 %v1205_v42 }
  0xa0   : > { %1014 = vmatprep.subr.bf16.mxu0 %v1206_v43 }
  0xa3   : > { %1015 = vmatpush3.bf16.msra.mxu0 %v1207_v44 }
  0xa4   : > { %1016 = vmatprep.subr.bf16.mxu0 %v1208_v45 }
  0xa7   : > { %1017 = vmatpush3.bf16.msra.mxu0 %v1209_v46 }
  0xa8   : > { %1018 = vmatprep.subr.bf16.mxu0 %v1210_v47 }
  0xab   : > { %1019 = vmatpush3.bf16.msra.mxu0 %v1211_v48 }
  0xac   : > { %1020 = vmatprep.subr.bf16.mxu0 %v1212_v49 }
  0xaf   : > { %1021 = vmatpush3.bf16.msra.mxu0 %v1213_v50 }
 0x152   : > { %v523_v51 = vpop.f32.mrf.mxu0  ;;  %v566_v3 = vpop.f32.mrf.mxu1 }
 0x153   : > { %v977_v52 = vmul.f32 -1.442695, %v523_v51 }
 0x154   : > { %v525_v53 = vpop.f32.mrf.mxu0  ;;  %v568_v4 = vpop.f32.mrf.mxu1 }
 0x155   : > { %1214 = vpow2.f32 %v977_v52  ;;  %v978_v54 = vmul.f32 -1.442695, %v525_v53 }
 0x156   : > { %v527_v55 = vpop.f32.mrf.mxu0  ;;  %v570_v8 = vpop.f32.mrf.mxu1 }
 0x157   : > { %1216 = vpow2.f32 %v978_v54  ;;  %v979_v56 = vmul.f32 -1.442695, %v527_v55 }
 0x158   : > { %v529_v57 = vpop.f32.mrf.mxu0  ;;  %v572_v15 = vpop.f32.mrf.mxu1 }
 0x159   : > { %1218 = vpow2.f32 %v979_v56  ;;  %v980_v58 = vmul.f32 -1.442695, %v529_v57 }
 0x15b   : > { %1220 = vpow2.f32 %v980_v58 }
 0x162   : > { %v1215_v59 = vpop.eup %1214 }
 0x163   : > { %v587_v61 = vadd.f32 1.0, %v1215_v59 }
 0x164   : > { %v1217_v60 = vpop.eup %1216 }
 0x165   : > { %v588_v62 = vadd.f32 1.0, %v1217_v60 }
 0x166   : > { %v1219_v63 = vpop.eup %1218 }
 0x167   : > { %1222 = vrcp.f32 %v588_v62  ;;  %v589_v0 = vadd.f32 1.0, %v1219_v63 }
 0x168   : > { %v1221_v1 = vpop.eup %1220  ;;  %1224 = vrcp.f32 %v587_v61 }
 0x169   : > { %1226 = vrcp.f32 %v589_v0  ;;  %v590_v2 = vadd.f32 1.0, %v1221_v1 }
 0x16b   : > { %1228 = vrcp.f32 %v590_v2 }
 0x174   : > { %v1223_v5 = vpop.eup %1222 }
 0x175   : > { %v1225_v6 = vpop.eup %1224  ;;  %v600_v9 = vmul.f32 %v1223_v5, %v525_v53 }
 0x176   : > { %v1227_v7 = vpop.eup %1226  ;;  %v599_v12 = vmul.f32 %v1225_v6, %v523_v51 }
 0x177   : > { %v601_v10 = vmul.f32 %v1227_v7, %v527_v55  ;;  %v604_v16 = vmul.f32 %v600_v9, %v568_v4 }
 0x178   : > { %v1229_v11 = vpop.eup %1228  ;;  %v603_v18 = vmul.f32 %v599_v12, %v566_v3 }
 0x179   : > { %v602_v13 = vmul.f32 %v1229_v11, %v529_v57  ;;  %v605_v14 = vmul.f32 %v601_v10, %v570_v8 }
 0x17b   : > { %v606_v17 = vmul.f32 %v602_v13, %v572_v15  ;;  %v609_v20 = vpack.c.bf16 %v605_v14, %v603_v18 }
 0x17d   : > { %v610_v19 = vpack.c.bf16 %v606_v17, %v604_v16 }
 0x17f   : > { %771 = vmatprep.mubr.bf16.mxu0 %v610_v19 }
 0x180   : > { %772 = vmatmul.mubr.bf16.vlgmr.msra.gmra.mxu0 %v609_v20 }
 0x240   : > { %v1022_v21 = vpop.f32.mrf.mxu0 }
 0x242   : > { %v1023_v23 = vpop.f32.mrf.mxu0 }
 0x243   : > { %v1024_v24 = vadd.f32 %v1023_v23, %v1022_v21 }
 0x244   : > { %v1025_v25 = vpop.f32.mrf.mxu0 }
 0x245   : > { %v780_v26 = vadd.f32 %v1024_v24, %v607_v22 }
 0x246   : > { %v1026_v28 = vpop.f32.mrf.mxu0 }
 0x247   : > { %782 = vst [vmem:[%s1689_s24] sm:$0xff] %v780_v26  ;;  %v1027_v29 = vadd.f32 %v1026_v28, %v1025_v25 }
 0x249   : > { %v781_v30 = vadd.f32 %v1027_v29, %v608_v27 }
 0x24b   : > { %783 = vst [vmem:[%s1689_s24 + $0x8] sm:$0xff] %v781_v30 }
 0x24c   : > { %1327 = shalt.err (!%p1324_p5)
}
 0x24d   : > { %s1328_s21 = scalar_lea.hbm %s1751_s5, 256  ;;  %s1332_s0 = scalar_lea.hbm %s1859_s26, 512 }
 0x24e   : > { %p1329_p2 = scmp.ne.s32.totalorder %s1751_s5, %s1328_s21  ;;  %p1333_p4 = scmp.lt.s32.totalorder %s1751_s5, %s1859_s26 }
 0x24f   : > { %p1334_p8 = scmp.lt.s32.totalorder %s1332_s0, %s1328_s21 }
 0x250   : > { %p1330_p6 = pnand %p1329_p2, %p1622_p0 }
 0x251   : > { %p1335_p7 = por %p1334_p8, %p1333_p4 }
 0x252   : > { %p1331_p12 = pneg %p1330_p6 }
 0x254   : > { %p1336_p11 = pnand %p1335_p7, %p1331_p12 }
 0x256   : > { %1339 = shalt.err (!%p1336_p11)
}
 0x257   : > { %s1451_s10 = smov 128   ;;  %s1452_s11 = smov 8  }
 0x258   : > { %1034 = dma.vmem_to_hbm [thread:$0]  (%p1622_p0), %s1753_s9, 256, %s1751_s5, %s785_s3, %s1451_s10, %s1451_s10, %s1452_s11  }
 0x259 PF: > { %s1860_s8 = sld [smem:[#allocation20_spill]]  ;;  %p1051_p1 = scmp.ge.s32.totalorder %s1438_s22, 2 }
 0x25a   : > { %s813_s4 = sand.u32 1, %s1410_s15  }
 0x25b   : > { %s814_s7 = scalar_lea.sflag [#allocation4], %s813_s4 }
 0x25f   : > { %p1861_p10 = scmp.ne.s32.totalorder %s1860_s8, 0 }
 0x261   : > { %p1047_p3 = pnand %p1051_p1, %p1861_p10 }
 0x263   : > { %p1048_p9 = pneg %p1047_p3 }
 0x265   : > { %1393 = dma.done.wait (%p1048_p9), %s814_s7, 256  }
 0x266   : > { %1395 = vsyncadd (%p1048_p9), %s814_s7, 4294967040  ;;  %s22_s22 = sadd.s32 1, %s1438_s22   ;;  %s1862_s24 = sld [smem:[#allocation12_spill]] }
 0x267   : > { %p19_p13 = scmp.ge.s32.totalorder %s22_s22, 6   ;;  %s1863_s14 = sld [smem:[#allocation16_spill]] }
 0x268   : > { %s1864_s1 = sld [smem:[#allocation13_spill]]  ;;  %s1869_s12 = smov %s1402_s13 }
 0x269   : > { %s1865_s17 = sld [smem:[#allocation19_spill]]  ;;  %s1871_s15 = smov %s1414_s16 }
 0x26a   : > { %s1866_s19 = sld [smem:[#allocation14_spill]]  ;;  %s1873_s18 = smov %s1430_s20 }
 0x26b   : > { %s1867_s25 = sld [smem:[#allocation15_spill]] }
 0x26c   : > { %s1868_s21 = sld [smem:[#allocation17_spill]]  ;;  %s1870_s13 = smov %s1862_s24 }
 0x26d   :  { %21 = sbr.rel (!%p19_p13) target bundleno = 15 (0xf), region = 105 }
 0x26e   : > { %s1872_s16 = smov %s1864_s1 }
 0x271   : > { %s1874_s20 = smov %s1867_s25 }
 0x272   :  { %819 = vsyncpa [#allocation3], 1 }
 0x273   :  { %821 = vsyncpa [#allocation3 + $0x1], 1 }
 0x274   :  { %822 = vsyncpa [#allocation6], 1 }
 0x275   :  { %824 = vsyncpa [#allocation6 + $0x1], 1 }
 0x276   :  { %825 = vsyncpa [#allocation4], 1 }
 0x277   :  { %827 = vsyncpa [#allocation4 + $0x1], 1 }

</bundles_post_ra>
